<compile_context>
chip_gen: v7x
topology: tpu7x:2x2x1
jax: 0.10.0
libtpu: 0.0.40
codegen_flags: <defaults>
</compile_context>

<pallas_src>
import functools

import jax
import jax.numpy as jnp
import numpy as np
from jax.experimental import pallas as pl
from jax.experimental.pallas import tpu as pltpu


def _round_up(n, m):
    return ((n + m - 1) // m) * m


# ------------------------------- Pallas kernel -------------------------------
def _quad_mlp_kernel(nw_ref, xt_ref, j_ref, bias_ref,
                     w1_ref, b1_ref, w2_ref, b2_ref, w3_ref, b3_ref,
                     wo_ref, bo_ref, o_ref):
    # xt tile: (D, TB) float32 -- batch on the lane axis.
    xs = 2.0 * xt_ref[...] - 1.0

    # Quadratic energy + linear bias, fused into one reduction:
    #   sum_d (J @ xs + bias)[d, i] * xs[d, i]  ==  x_i^T J x_i + bias . x_i
    y = jnp.dot(j_ref[...], xs, preferred_element_type=jnp.float32)        # (D, TB)
    f_quad = jnp.sum((y + bias_ref[...]) * xs, axis=0, keepdims=True)      # (1, TB)

    # MLP in transposed form: h <- SiLU(W @ h + b), W is (out, in), b is (out, 1)
    h = xs
    for w_ref, b_ref in ((w1_ref, b1_ref), (w2_ref, b2_ref), (w3_ref, b3_ref)):
        h = jnp.dot(w_ref[...], h, preferred_element_type=jnp.float32) + b_ref[...]
        h = h * jax.nn.sigmoid(h)                                          # SiLU
    # Output head: (H, 1) weight column; sublane-reduce keeps result lane-dense.
    f_net = jnp.sum(wo_ref[...] * h, axis=0, keepdims=True) + bo_ref[...]  # (1, TB)

    # net_weight as an SMEM scalar (traced value, no recompiles on change).
    o_ref[...] = f_quad + nw_ref[0, 0] * f_net


# --------------------------- one-time param prep ------------------------------
def prepare_params(params):
    """Hoisted preprocessing: symmetrize J, transpose weights to (out, in),
    reshape biases to column vectors.  Call once, reuse across forward calls."""
    f32 = lambda a: jnp.asarray(a, jnp.float32)
    G = f32(params["G"])
    return dict(
        J=0.5 * (G + G.T),
        bias=f32(params["bias"]).reshape(-1, 1),
        w1=f32(params["w1"]).T, b1=f32(params["b1"]).reshape(-1, 1),
        w2=f32(params["w2"]).T, b2=f32(params["b2"]).reshape(-1, 1),
        w3=f32(params["w3"]).T, b3=f32(params["b3"]).reshape(-1, 1),
        wo=f32(params["wo"]).reshape(-1, 1),
        bo=f32(params["bo"]).reshape(1, 1),
    )


# ---------------------------------- wrapper -----------------------------------
@functools.partial(jax.jit, static_argnames=("tile_b",))
def quadratic_neural_forward(x, prep, net_weight, *, tile_b=512):
    """x: (B, D) or (B, ...) flattened to (B, D). Returns (B,) float32."""
    if x.ndim > 2:
        x = x.reshape(x.shape[0], -1)
    x = x.astype(jnp.float32)
    B, D = x.shape
    H = prep["w1"].shape[0]

    # Large, lane-aligned batch tile; ragged batches zero-padded + sliced back.
    tb = min(tile_b, _round_up(B, 128))
    b_pad = _round_up(B, tb)
    grid = b_pad // tb

    # Batch on the lane axis: (D, B_pad).
    xt = jnp.pad(x, ((0, b_pad - B), (0, 0))).T
    nw = jnp.asarray(net_weight, jnp.float32).reshape(1, 1)

    const = lambda shape: pl.BlockSpec(shape, lambda i: (0, 0))

    cost = pl.CostEstimate(
        flops=2 * b_pad * (D * D + D * H + 2 * H * H + H) + 6 * b_pad * (D + H),
        transcendentals=3 * b_pad * H,
        bytes_accessed=4 * (2 * D * b_pad + b_pad + D * D + D
                            + D * H + 2 * H * H + 4 * H + 1),
    )

    out = pl.pallas_call(
        _quad_mlp_kernel,
        out_shape=jax.ShapeDtypeStruct((1, b_pad), jnp.float32),
        grid_spec=pltpu.PrefetchScalarGridSpec(
            num_scalar_prefetch=0,
            grid=(grid,),
            in_specs=[
                pl.BlockSpec(memory_space=pltpu.MemorySpace.SMEM),  # net_weight (1,1)
                pl.BlockSpec((D, tb), lambda i: (0, i)),            # x^T tile
                const((D, D)),                                      # J (symmetric)
                const((D, 1)),                                      # bias column
                const((H, D)), const((H, 1)),                       # layer 1
                const((H, H)), const((H, 1)),                       # layer 2
                const((H, H)), const((H, 1)),                       # layer 3
                const((H, 1)), const((1, 1)),                       # output head
            ],
            # Lane-dense output slab: (1, tile_b) per grid step.
            out_specs=pl.BlockSpec((1, tb), lambda i: (0, i)),
        ),
        compiler_params=pltpu.CompilerParams(dimension_semantics=("parallel",)),
        cost_estimate=cost,
    )(nw, xt, prep["J"], prep["bias"],
      prep["w1"], prep["b1"], prep["w2"], prep["b2"], prep["w3"], prep["b3"],
      prep["wo"], prep["bo"])
    return out.reshape(-1)[:B]


# ---------------------------- deterministic params ----------------------------
def make_params(key, data_dim, hsize):
    ks = jax.random.split(key, 10)
    # G ~ N(0,1) * 0.01 ; bias = log(init_bias + 0.01), init_bias = 1/data_dim
    G = jax.random.normal(ks[0], (data_dim, data_dim), jnp.float32) * 0.01
    init_bias = jnp.ones((data_dim,), jnp.float32) / data_dim
    bias = jnp.log(init_bias + 0.01)

    def linear(kw, kb, fan_in, fan_out):
        lim = 1.0 / np.sqrt(fan_in)
        w = jax.random.uniform(kw, (fan_in, fan_out), jnp.float32, -lim, lim)
        b = jax.random.uniform(kb, (fan_out,), jnp.float32, -lim, lim)
        return w, b

    w1, b1 = linear(ks[1], ks[2], data_dim, hsize)
    w2, b2 = linear(ks[3], ks[4], hsize, hsize)
    w3, b3 = linear(ks[5], ks[6], hsize, hsize)
    wo, bo = linear(ks[7], ks[8], hsize, 1)
    return dict(G=G, bias=bias, w1=w1, b1=b1, w2=w2, b2=b2, w3=w3, b3=b3,
                wo=wo, bo=bo)


# ------------------------------ pure-JAX reference -----------------------------
def reference_forward(x, params, net_weight):
    if x.ndim > 2:
        x = x.reshape(x.shape[0], -1)
    xs = 2.0 * x - 1.0
    J = 0.5 * (params["G"] + params["G"].T)
    f_quad = jnp.sum((xs @ J) * xs, -1) + jnp.sum(params["bias"] * xs, -1)
    h = xs
    for w, b in ((params["w1"], params["b1"]),
                 (params["w2"], params["b2"]),
                 (params["w3"], params["b3"])):
        h = h @ w + b
        h = h * jax.nn.sigmoid(h)
    f_net = (h @ params["wo"] + params["bo"]).squeeze(-1)
    return f_quad + net_weight * f_net


if __name__ == "__main__":
    key = jax.random.PRNGKey(0)
    kx1, kx2, kp = jax.random.split(key, 3)

    D, H = 32, 32
    net_weight = 0.5
    params = make_params(kp, D, H)
    prep = prepare_params(params)

    # Case 1: tiny batch, single tile (batch padded up to 128 lanes).
    B1 = 16
    x1 = jax.random.bernoulli(kx1, 0.5, (B1, D)).astype(jnp.float32)
    out1 = jax.block_until_ready(quadratic_neural_forward(x1, prep, net_weight))
    np.testing.assert_allclose(
        np.asarray(out1), np.asarray(reference_forward(x1, params, net_weight)),
        rtol=1e-5, atol=1e-5)

    # Case 2: ragged batch, multiple grid steps (exercises padding + slicing).
    B2 = 200
    x2 = jax.random.bernoulli(kx2, 0.5, (B2, D)).astype(jnp.float32)
    out2 = jax.block_until_ready(
        quadratic_neural_forward(x2, prep, net_weight, tile_b=128))
    np.testing.assert_allclose(
        np.asarray(out2), np.asarray(reference_forward(x2, params, net_weight)),
        rtol=1e-5, atol=1e-5)

    print("KERNEL_OK")
</pallas_src>

<mosaic_0001>
module attributes {stable_mosaic.version = 11 : i64} {
  func.func @_quad_mlp_kernel(%arg0: i32, %arg1: memref<1x1xf32, #tpu.memory_space<smem>>, %arg2: memref<32x128xf32, #tpu.memory_space<vmem>>, %arg3: memref<32x32xf32, #tpu.memory_space<vmem>>, %arg4: memref<32x1xf32, #tpu.memory_space<vmem>>, %arg5: memref<32x32xf32, #tpu.memory_space<vmem>>, %arg6: memref<32x1xf32, #tpu.memory_space<vmem>>, %arg7: memref<32x32xf32, #tpu.memory_space<vmem>>, %arg8: memref<32x1xf32, #tpu.memory_space<vmem>>, %arg9: memref<32x32xf32, #tpu.memory_space<vmem>>, %arg10: memref<32x1xf32, #tpu.memory_space<vmem>>, %arg11: memref<32x1xf32, #tpu.memory_space<vmem>>, %arg12: memref<1x1xf32, #tpu.memory_space<vmem>>, %arg13: memref<1x128xf32, #tpu.memory_space<vmem>>) attributes {dimension_semantics = [#tpu.dimension_semantics<parallel>], iteration_bounds = array<i64: 1>, scalar_prefetch = 0 : i64, scratch_operands = 0 : i64, tpu.core_type = #tpu.core_type<tc>, window_params = [{transform_indices = @transform_0, window_bounds = array<i64: 1, 1>}, {transform_indices = @transform_1, window_bounds = array<i64: 32, 128>}, {pipeline_mode = #tpu.pipeline_mode<synchronous>, transform_indices = @transform_2, window_bounds = array<i64: 32, 32>}, {pipeline_mode = #tpu.pipeline_mode<synchronous>, transform_indices = @transform_3, window_bounds = array<i64: 32, 1>}, {pipeline_mode = #tpu.pipeline_mode<synchronous>, transform_indices = @transform_4, window_bounds = array<i64: 32, 32>}, {pipeline_mode = #tpu.pipeline_mode<synchronous>, transform_indices = @transform_5, window_bounds = array<i64: 32, 1>}, {pipeline_mode = #tpu.pipeline_mode<synchronous>, transform_indices = @transform_6, window_bounds = array<i64: 32, 32>}, {pipeline_mode = #tpu.pipeline_mode<synchronous>, transform_indices = @transform_7, window_bounds = array<i64: 32, 1>}, {pipeline_mode = #tpu.pipeline_mode<synchronous>, transform_indices = @transform_8, window_bounds = array<i64: 32, 32>}, {pipeline_mode = #tpu.pipeline_mode<synchronous>, transform_indices = @transform_9, window_bounds = array<i64: 32, 1>}, {pipeline_mode = #tpu.pipeline_mode<synchronous>, transform_indices = @transform_10, window_bounds = array<i64: 32, 1>}, {pipeline_mode = #tpu.pipeline_mode<synchronous>, transform_indices = @transform_11, window_bounds = array<i64: 1, 1>}, {transform_indices = @transform_12, window_bounds = array<i64: 1, 128>}]} {
    %c0 = arith.constant 0 : index
    %c0_0 = arith.constant 0 : index
    %0 = vector.load %arg2[%c0, %c0_0] : memref<32x128xf32, #tpu.memory_space<vmem>>, vector<32x128xf32>
    %cst = arith.constant 2.000000e+00 : f32
    %1 = vector.broadcast %cst : f32 to vector<32x128xf32>
    %2 = arith.mulf %1, %0 : vector<32x128xf32>
    %cst_1 = arith.constant 1.000000e+00 : f32
    %3 = vector.broadcast %cst_1 : f32 to vector<32x128xf32>
    %4 = arith.subf %2, %3 : vector<32x128xf32>
    %c0_2 = arith.constant 0 : index
    %c0_3 = arith.constant 0 : index
    %5 = vector.load %arg3[%c0_2, %c0_3] : memref<32x32xf32, #tpu.memory_space<vmem>>, vector<32x32xf32>
    %cst_4 = arith.constant dense<0.000000e+00> : vector<32x128xf32>
    %6 = tpu.matmul %5, %4, %cst_4 {dimension_numbers = #tpu.dot_dimension_numbers<[1], [0], [0], [1], [0, 0, 1, 1], [], []>} : vector<32x32xf32>, vector<32x128xf32>, vector<32x128xf32> -> vector<32x128xf32>
    %c0_5 = arith.constant 0 : index
    %c0_6 = arith.constant 0 : index
    %7 = vector.load %arg4[%c0_5, %c0_6] : memref<32x1xf32, #tpu.memory_space<vmem>>, vector<32x1xf32>
    %8 = vector.broadcast %7 : vector<32x1xf32> to vector<32x128xf32>
    %9 = arith.addf %6, %8 : vector<32x128xf32>
    %10 = arith.mulf %9, %4 : vector<32x128xf32>
    %cst_7 = arith.constant dense<0.000000e+00> : vector<128xf32>
    %11 = vector.multi_reduction <add>, %10, %cst_7 [0] : vector<32x128xf32> to vector<128xf32>
    %12 = vector.shape_cast %11 : vector<128xf32> to vector<1x128xf32>
    %c0_8 = arith.constant 0 : index
    %c0_9 = arith.constant 0 : index
    %13 = vector.load %arg5[%c0_8, %c0_9] : memref<32x32xf32, #tpu.memory_space<vmem>>, vector<32x32xf32>
    %cst_10 = arith.constant dense<0.000000e+00> : vector<32x128xf32>
    %14 = tpu.matmul %13, %4, %cst_10 {dimension_numbers = #tpu.dot_dimension_numbers<[1], [0], [0], [1], [0, 0, 1, 1], [], []>} : vector<32x32xf32>, vector<32x128xf32>, vector<32x128xf32> -> vector<32x128xf32>
    %c0_11 = arith.constant 0 : index
    %c0_12 = arith.constant 0 : index
    %15 = vector.load %arg6[%c0_11, %c0_12] : memref<32x1xf32, #tpu.memory_space<vmem>>, vector<32x1xf32>
    %16 = vector.broadcast %15 : vector<32x1xf32> to vector<32x128xf32>
    %17 = arith.addf %14, %16 : vector<32x128xf32>
    %18 = arith.negf %17 : vector<32x128xf32>
    %19 = math.exp %18 : vector<32x128xf32>
    %cst_13 = arith.constant 1.000000e+00 : f32
    %20 = vector.broadcast %cst_13 : f32 to vector<32x128xf32>
    %21 = arith.addf %20, %19 : vector<32x128xf32>
    %22 = arith.divf %20, %21 : vector<32x128xf32>
    %23 = arith.mulf %17, %22 : vector<32x128xf32>
    %c0_14 = arith.constant 0 : index
    %c0_15 = arith.constant 0 : index
    %24 = vector.load %arg7[%c0_14, %c0_15] : memref<32x32xf32, #tpu.memory_space<vmem>>, vector<32x32xf32>
    %cst_16 = arith.constant dense<0.000000e+00> : vector<32x128xf32>
    %25 = tpu.matmul %24, %23, %cst_16 {dimension_numbers = #tpu.dot_dimension_numbers<[1], [0], [0], [1], [0, 0, 1, 1], [], []>} : vector<32x32xf32>, vector<32x128xf32>, vector<32x128xf32> -> vector<32x128xf32>
    %c0_17 = arith.constant 0 : index
    %c0_18 = arith.constant 0 : index
    %26 = vector.load %arg8[%c0_17, %c0_18] : memref<32x1xf32, #tpu.memory_space<vmem>>, vector<32x1xf32>
    %27 = vector.broadcast %26 : vector<32x1xf32> to vector<32x128xf32>
    %28 = arith.addf %25, %27 : vector<32x128xf32>
    %29 = arith.negf %28 : vector<32x128xf32>
    %30 = math.exp %29 : vector<32x128xf32>
    %cst_19 = arith.constant 1.000000e+00 : f32
    %31 = vector.broadcast %cst_19 : f32 to vector<32x128xf32>
    %32 = arith.addf %31, %30 : vector<32x128xf32>
    %33 = arith.divf %31, %32 : vector<32x128xf32>
    %34 = arith.mulf %28, %33 : vector<32x128xf32>
    %c0_20 = arith.constant 0 : index
    %c0_21 = arith.constant 0 : index
    %35 = vector.load %arg9[%c0_20, %c0_21] : memref<32x32xf32, #tpu.memory_space<vmem>>, vector<32x32xf32>
    %cst_22 = arith.constant dense<0.000000e+00> : vector<32x128xf32>
    %36 = tpu.matmul %35, %34, %cst_22 {dimension_numbers = #tpu.dot_dimension_numbers<[1], [0], [0], [1], [0, 0, 1, 1], [], []>} : vector<32x32xf32>, vector<32x128xf32>, vector<32x128xf32> -> vector<32x128xf32>
    %c0_23 = arith.constant 0 : index
    %c0_24 = arith.constant 0 : index
    %37 = vector.load %arg10[%c0_23, %c0_24] : memref<32x1xf32, #tpu.memory_space<vmem>>, vector<32x1xf32>
    %38 = vector.broadcast %37 : vector<32x1xf32> to vector<32x128xf32>
    %39 = arith.addf %36, %38 : vector<32x128xf32>
    %40 = arith.negf %39 : vector<32x128xf32>
    %41 = math.exp %40 : vector<32x128xf32>
    %cst_25 = arith.constant 1.000000e+00 : f32
    %42 = vector.broadcast %cst_25 : f32 to vector<32x128xf32>
    %43 = arith.addf %42, %41 : vector<32x128xf32>
    %44 = arith.divf %42, %43 : vector<32x128xf32>
    %45 = arith.mulf %39, %44 : vector<32x128xf32>
    %c0_26 = arith.constant 0 : index
    %c0_27 = arith.constant 0 : index
    %46 = vector.load %arg11[%c0_26, %c0_27] : memref<32x1xf32, #tpu.memory_space<vmem>>, vector<32x1xf32>
    %47 = vector.broadcast %46 : vector<32x1xf32> to vector<32x128xf32>
    %48 = arith.mulf %47, %45 : vector<32x128xf32>
    %cst_28 = arith.constant dense<0.000000e+00> : vector<128xf32>
    %49 = vector.multi_reduction <add>, %48, %cst_28 [0] : vector<32x128xf32> to vector<128xf32>
    %50 = vector.shape_cast %49 : vector<128xf32> to vector<1x128xf32>
    %c0_29 = arith.constant 0 : index
    %c0_30 = arith.constant 0 : index
    %51 = vector.load %arg12[%c0_29, %c0_30] : memref<1x1xf32, #tpu.memory_space<vmem>>, vector<1x1xf32>
    %52 = vector.broadcast %51 : vector<1x1xf32> to vector<1x128xf32>
    %53 = arith.addf %50, %52 : vector<1x128xf32>
    %c0_31 = arith.constant 0 : index
    %c0_32 = arith.constant 0 : index
    %54 = memref.load %arg1[%c0_31, %c0_32] : memref<1x1xf32, #tpu.memory_space<smem>>
    %55 = vector.broadcast %54 : f32 to vector<1x128xf32>
    %56 = arith.mulf %55, %53 : vector<1x128xf32>
    %57 = arith.addf %12, %56 : vector<1x128xf32>
    %c0_33 = arith.constant 0 : index
    %c0_34 = arith.constant 0 : index
    %58 = vector.load %arg13[%c0_33, %c0_34] : memref<1x128xf32, #tpu.memory_space<vmem>>, vector<1x128xf32>
    tpu.vector_store %arg13[%c0_33, %c0_34], %57 {strides = array<i32>} : memref<1x128xf32, #tpu.memory_space<vmem>>, vector<1x128xf32>,
    return
  }
  func.func @transform_0(%arg0: i32) -> (i32, i32) {
    %c0_i32 = arith.constant 0 : i32
    %c0_i32_0 = arith.constant 0 : i32
    %c0_i32_1 = arith.constant 0 : i32
    return %c0_i32, %c0_i32_0 : i32, i32
  }
  func.func @transform_1(%arg0: i32) -> (i32, i32) {
    %c0_i32 = arith.constant 0 : i32
    %c0_i32_0 = arith.constant 0 : i32
    return %c0_i32, %arg0 : i32, i32
  }
  func.func @transform_2(%arg0: i32) -> (i32, i32) {
    %c0_i32 = arith.constant 0 : i32
    %c0_i32_0 = arith.constant 0 : i32
    %c0_i32_1 = arith.constant 0 : i32
    return %c0_i32, %c0_i32_0 : i32, i32
  }
  func.func @transform_3(%arg0: i32) -> (i32, i32) {
    %c0_i32 = arith.constant 0 : i32
    %c0_i32_0 = arith.constant 0 : i32
    %c0_i32_1 = arith.constant 0 : i32
    return %c0_i32, %c0_i32_0 : i32, i32
  }
  func.func @transform_4(%arg0: i32) -> (i32, i32) {
    %c0_i32 = arith.constant 0 : i32
    %c0_i32_0 = arith.constant 0 : i32
    %c0_i32_1 = arith.constant 0 : i32
    return %c0_i32, %c0_i32_0 : i32, i32
  }
  func.func @transform_5(%arg0: i32) -> (i32, i32) {
    %c0_i32 = arith.constant 0 : i32
    %c0_i32_0 = arith.constant 0 : i32
    %c0_i32_1 = arith.constant 0 : i32
    return %c0_i32, %c0_i32_0 : i32, i32
  }
  func.func @transform_6(%arg0: i32) -> (i32, i32) {
    %c0_i32 = arith.constant 0 : i32
    %c0_i32_0 = arith.constant 0 : i32
    %c0_i32_1 = arith.constant 0 : i32
    return %c0_i32, %c0_i32_0 : i32, i32
  }
  func.func @transform_7(%arg0: i32) -> (i32, i32) {
    %c0_i32 = arith.constant 0 : i32
    %c0_i32_0 = arith.constant 0 : i32
    %c0_i32_1 = arith.constant 0 : i32
    return %c0_i32, %c0_i32_0 : i32, i32
  }
  func.func @transform_8(%arg0: i32) -> (i32, i32) {
    %c0_i32 = arith.constant 0 : i32
    %c0_i32_0 = arith.constant 0 : i32
    %c0_i32_1 = arith.constant 0 : i32
    return %c0_i32, %c0_i32_0 : i32, i32
  }
  func.func @transform_9(%arg0: i32) -> (i32, i32) {
    %c0_i32 = arith.constant 0 : i32
    %c0_i32_0 = arith.constant 0 : i32
    %c0_i32_1 = arith.constant 0 : i32
    return %c0_i32, %c0_i32_0 : i32, i32
  }
  func.func @transform_10(%arg0: i32) -> (i32, i32) {
    %c0_i32 = arith.constant 0 : i32
    %c0_i32_0 = arith.constant 0 : i32
    %c0_i32_1 = arith.constant 0 : i32
    return %c0_i32, %c0_i32_0 : i32, i32
  }
  func.func @transform_11(%arg0: i32) -> (i32, i32) {
    %c0_i32 = arith.constant 0 : i32
    %c0_i32_0 = arith.constant 0 : i32
    %c0_i32_1 = arith.constant 0 : i32
    return %c0_i32, %c0_i32_0 : i32, i32
  }
  func.func @transform_12(%arg0: i32) -> (i32, i32) {
    %c0_i32 = arith.constant 0 : i32
    %c0_i32_0 = arith.constant 0 : i32
    return %c0_i32, %arg0 : i32, i32
  }
}

</mosaic_0001>

<bundles_post_ra>
// kernel: quadratic_neural_forward.1
= control target key start
LH: loop header
LB: loop body
LE: loop exit
PB: predicated region body
PF: predicated region fallthrough
CT: control target
= control target key end

     0   :  { %vm84_vm0 = vcmask 261120   ;;  %v914_v3 = vmov 0   ;;  %s1175_s1 = inlined_call_operand.vmem [shape: f32[32,128], index: 1, kind: input, shape index: {}]   ;;  %s1176_s2 = inlined_call_operand.vmem [shape: f32[32,32], index: 2, kind: input, shape index: {}]   ;;  %s1177_s4 = inlined_call_operand.vmem [shape: f32[32,32], index: 4, kind: input, shape index: {}]   ;;  %s1178_s11 = inlined_call_operand.<no memory space> [shape: f32[1,1], index: 11, kind: input, shape index: {}]   ;;  %s1179_s5 = inlined_call_operand.vmem [shape: f32[32,1], index: 5, kind: input, shape index: {}]   ;;  %s1180_s7 = inlined_call_operand.vmem [shape: f32[32,1], index: 7, kind: input, shape index: {}]   ;;  %s1181_s9 = inlined_call_operand.vmem [shape: f32[32,1], index: 9, kind: input, shape index: {}]   ;;  %s1182_s10 = inlined_call_operand.vmem [shape: f32[32,1], index: 10, kind: input, shape index: {}]   ;;  %s1183_s3 = inlined_call_operand.vmem [shape: f32[32,1], index: 3, kind: input, shape index: {}]   ;;  %s1184_s6 = inlined_call_operand.vmem [shape: f32[32,32], index: 6, kind: input, shape index: {}]   ;;  %s1185_s8 = inlined_call_operand.vmem [shape: f32[32,32], index: 8, kind: input, shape index: {}]   ;;  %s1186_s0 = inlined_call_operand.<no memory space> [shape: f32[1,1], index: 0, kind: input, shape index: {}]   ;;  %s1187_s12 = inlined_call_operand.vmem [shape: f32[1,128], index: 12, kind: output, shape index: {}]  }
   0x1   :  { %v44_v0 = vld [vmem:[%s1175_s1] sm:$0xff]  ;;  %v45_v1 = vld [vmem:[%s1175_s1 + $0x8] sm:$0xff]  ;;  %v46_v2 = vld [vmem:[%s1175_s1 + $0x10] sm:$0xff]  ;;  %864 = vset.pattern.permute.xlu0 %v914_v3  ;;  %865 = vset.pattern.permute.xlu1 %v914_v3  ;;  %v18_v4 = vstv %s1178_s11 }
   0x2   :  { %v48_v5 = vmul.f32 2.0, %v44_v0  ;;  %v49_v6 = vmul.f32 2.0, %v45_v1  ;;  %v47_v7 = vld [vmem:[%s1175_s1 + $0x18] sm:$0xff]  ;;  %v50_v8 = vmul.f32 2.0, %v46_v2  ;;  %v56_v9 = vld [vmem:[%s1176_s2] sm:$0xff]  ;;  %v201_v17 = vld [vmem:[%s1179_s5 + $0x10] sm:$0xff] }
   0x3   :  { %v195_v10 = vld [vmem:[%s1177_s4] sm:$0xff]  ;;  %19 = vst [vmem:[#allocation3] sm:$0x1] %v18_v4  ;;  %v51_v11 = vmul.f32 2.0, %v47_v7  ;;  %783 = vmatprep.mubr.msk.f32.mxu0 %vm84_vm0, %v56_v9  ;;  %215 = vperm.xlu1 %865, %v201_v17   ;;  %v200_v20 = vld [vmem:[%s1179_s5 + $0x8] sm:$0xff]  ;;  %v202_v21 = vld [vmem:[%s1179_s5 + $0x18] sm:$0xff] }
   0x4   :  { %797 = vmatprep.mubr.msk.f32.mxu1 %vm84_vm0, %v195_v10  ;;  %v1003_v12 = vadd.f32 -1.0, %v48_v5  ;;  %v1005_v13 = vadd.f32 -1.0, %v49_v6  ;;  %v1007_v14 = vadd.f32 -1.0, %v50_v8  ;;  %v199_v16 = vld [vmem:[%s1179_s5] sm:$0xff]  ;;  %v353_v23 = vld [vmem:[%s1180_s7 + $0x8] sm:$0xff]  ;;  %v58_v26 = vld [vmem:[%s1176_s2 + $0x10] sm:$0xff] }
   0x5   :  { %v1009_v15 = vadd.f32 -1.0, %v51_v11  ;;  %205 = vperm.xlu0 %864, %v199_v16   ;;  %v352_v22 = vld [vmem:[%s1180_s7] sm:$0xff]  ;;  %v57_v24 = vld [vmem:[%s1176_s2 + $0x8] sm:$0xff]  ;;  %v197_v27 = vld [vmem:[%s1177_s4 + $0x10] sm:$0xff] }
   0x6   :  { %v831_v18 = vpack.c.bf16 %v1005_v13, %v1003_v12  ;;  %v196_v25 = vld [vmem:[%s1177_s4 + $0x8] sm:$0xff]  ;;  %v354_v28 = vld [vmem:[%s1180_s7 + $0x10] sm:$0xff]  ;;  %v355_v29 = vld [vmem:[%s1180_s7 + $0x18] sm:$0xff] }
   0x7   :  { %v835_v19 = vpack.c.bf16 %v1009_v15, %v1007_v14  ;;  %220 = vperm.xlu1 %865, %v202_v21   ;;  %v59_v30 = vld [vmem:[%s1176_s2 + $0x18] sm:$0xff]  ;;  %v505_v32 = vld [vmem:[%s1181_s9] sm:$0xff]  ;;  %v506_v33 = vld [vmem:[%s1181_s9 + $0x8] sm:$0xff] }
   0x8   :  { %832 = vmatprep.subr.bf16.mxu0 %v831_v18  ;;  %840 = vmatprep.subr.bf16.mxu1 %v831_v18  ;;  %v198_v31 = vld [vmem:[%s1177_s4 + $0x18] sm:$0xff]  ;;  %v507_v34 = vld [vmem:[%s1181_s9 + $0x10] sm:$0xff]  ;;  %v654_v36 = vld [vmem:[%s1182_s10] sm:$0xff] }
   0x9   :  { %834 = vmatpush3.bf16.msra.mxu0 %v831_v18  ;;  %842 = vmatpush3.bf16.msra.mxu1 %v831_v18  ;;  %v508_v35 = vld [vmem:[%s1181_s9 + $0x18] sm:$0xff]  ;;  %v655_v37 = vld [vmem:[%s1182_s10 + $0x8] sm:$0xff]  ;;  %v60_v38 = vld [vmem:[%s1183_s3] sm:$0xff] }
   0xa   :  { %836 = vmatprep.subr.bf16.mxu0 %v835_v19  ;;  %844 = vmatprep.subr.bf16.mxu1 %v835_v19  ;;  %v61_v39 = vld [vmem:[%s1183_s3 + $0x8] sm:$0xff]  ;;  %v656_v40 = vld [vmem:[%s1182_s10 + $0x10] sm:$0xff]  ;;  %v657_v42 = vld [vmem:[%s1182_s10 + $0x18] sm:$0xff] }
   0xb   :  { %210 = vperm.xlu0 %864, %v200_v20   ;;  %363 = vperm.xlu1 %865, %v353_v23   ;;  %v62_v41 = vld [vmem:[%s1183_s3 + $0x10] sm:$0xff]  ;;  %v63_v43 = vld [vmem:[%s1183_s3 + $0x18] sm:$0xff]  ;;  %v691_v44 = vld [vmem:[#allocation3] sm:$0x1] }
   0xc   :  { %v348_v45 = vld [vmem:[%s1184_s6] sm:$0xff] }
   0xd   :  { %838 = vmatpush3.bf16.msra.mxu0 %v835_v19  ;;  %846 = vmatpush3.bf16.msra.mxu1 %v835_v19 }
   0xf   :  { %358 = vperm.xlu0 %864, %v352_v22   ;;  %373 = vperm.xlu1 %865, %v355_v29  }
  0x10   :  { %784 = vmatmul.mubr.msk.f32.vlgmr.msra.gmra.mrb[0].mxu0 %vm84_vm0, %v57_v24  ;;  %798 = vmatmul.mubr.msk.f32.vlgmr.msra.gmra.mrb[0].mxu1 %vm84_vm0, %v196_v25 }
  0x11   :  { %786 = vmatprep.mubr.msk.f32.mxu0 %vm84_vm0, %v58_v26  ;;  %800 = vmatprep.mubr.msk.f32.mxu1 %vm84_vm0, %v197_v27 }
  0x13   :  { %368 = vperm.xlu0 %864, %v354_v28   ;;  %516 = vperm.xlu1 %865, %v506_v33  }
  0x14   :  { %787 = vmatmul.mubr.msk.f32.gmra.mrb[2].mxu0 %vm84_vm0, %v59_v30  ;;  %801 = vmatmul.mubr.msk.f32.gmra.mrb[2].mxu1 %vm84_vm0, %v198_v31 }
  0x15   :  { %811 = vmatprep.mubr.msk.f32.mxu0 %vm84_vm0, %v348_v45  ;;  %v349_v45 = vld [vmem:[%s1184_s6 + $0x8] sm:$0xff] }
  0x17   :  { %511 = vperm.xlu0 %864, %v505_v32   ;;  %526 = vperm.xlu1 %865, %v508_v35  }
  0x1b   :  { %521 = vperm.xlu0 %864, %v507_v34   ;;  %665 = vperm.xlu1 %865, %v655_v37  }
  0x1f   :  { %660 = vperm.xlu0 %864, %v654_v36   ;;  %71 = vperm.xlu1 %865, %v61_v39  }
  0x23   :  { %66 = vperm.xlu0 %864, %v60_v38   ;;  %76 = vperm.xlu1 %865, %v62_v41  }
  0x27   :  { %670 = vperm.xlu0 %864, %v656_v40   ;;  %81 = vperm.xlu1 %865, %v63_v43  }
  0x2b   :  { %675 = vperm.xlu0 %864, %v657_v42  }
  0x2f   :  { %694 = vperm.xlu0 %864, %v691_v44  }
  0x82   :  { %v216_v46 = vpop.permute.xlu1 %215 }
  0x84   :  { %v206_v48 = vpop.permute.xlu0 %205 }
  0x86   :  { %v221_v47 = vpop.permute.xlu1 %220 }
  0x8a   :  { %v1103_v49 = vpop.permute.xlu1 %363  ;;  %v211_v50 = vpop.permute.xlu0 %210 }
  0x8e   :  { %v1105_v51 = vpop.permute.xlu1 %373  ;;  %v1107_v52 = vpop.permute.xlu0 %358 }
  0x92   :  { %v1109_v53 = vpop.permute.xlu1 %516  ;;  %v1111_v54 = vpop.permute.xlu0 %368 }
  0x96   :  { %v1113_v55 = vpop.permute.xlu1 %526  ;;  %v1115_v56 = vpop.permute.xlu0 %511 }
  0x9a   :  { %v1117_v57 = vpop.permute.xlu1 %665  ;;  %v1119_v58 = vpop.permute.xlu0 %521 }
  0x9e   :  { %v72_v59 = vpop.permute.xlu1 %71  ;;  %v1121_v60 = vpop.permute.xlu0 %660 }
  0xa2   :  { %v77_v61 = vpop.permute.xlu1 %76  ;;  %v67_v62 = vpop.permute.xlu0 %66 }
  0xa6   :  { %v82_v9 = vpop.permute.xlu1 %81 }
  0xe3   :  { %v785_v63 = vpop.f32.mrb[0].mxu0  ;;  %v799_v0 = vpop.f32.mrb[0].mxu1 }
  0xe4   :  { %v169_v1 = vadd.f32 %v785_v63, %v72_v59  ;;  %v307_v2 = vadd.f32 %v799_v0, %v211_v50  ;;  %v163_v3 = vpop.f32.mrb[1].mxu0  ;;  %v301_v4 = vpop.f32.mrb[1].mxu1 }
  0xe5   :  { %v164_v5 = vadd.f32 %v163_v3, %v67_v62  ;;  %v302_v6 = vadd.f32 %v301_v4, %v206_v48  ;;  %v501_v48 = vld [vmem:[%s1185_s8] sm:$0xff] }
  0xe6   :  { %v183_v7 = vmul.f32 %v1005_v13, %v169_v1  ;;  %v724_v8 = vmul.f32 -1.442695, %v307_v2  ;;  %825 = vmatprep.mubr.msk.f32.mxu1 %vm84_vm0, %v501_v48 }
  0xe7   :  { %v182_v10 = vmul.f32 %v1003_v12, %v164_v5  ;;  %v723_v11 = vmul.f32 -1.442695, %v302_v6  ;;  %v788_v16 = vpop.f32.mrb[2].mxu0  ;;  %v802_v17 = vpop.f32.mrb[2].mxu1 }
  0xe8   :  { %866 = vpow2.f32 %v724_v8  ;;  %v179_v18 = vadd.f32 %v788_v16, %v82_v9  ;;  %v317_v19 = vadd.f32 %v802_v17, %v221_v47  ;;  %v173_v20 = vpop.f32.mrb[3].mxu0  ;;  %v311_v21 = vpop.f32.mrb[3].mxu1  ;;  %v351_v47 = vld [vmem:[%s1184_s6 + $0x18] sm:$0xff] }
  0xe9   :  { %v186_v22 = vadd.f32 %v183_v7, %v182_v10  ;;  %868 = vpow2.f32 %v723_v11  ;;  %v174_v23 = vadd.f32 %v173_v20, %v77_v61  ;;  %v312_v24 = vadd.f32 %v311_v21, %v216_v46  ;;  %v350_v46 = vld [vmem:[%s1184_s6 + $0x10] sm:$0xff] }
  0xea   :  { %v726_v25 = vmul.f32 -1.442695, %v317_v19  ;;  %v185_v27 = vmul.f32 %v1009_v15, %v179_v18 }
  0xeb   :  { %v184_v26 = vmul.f32 %v1007_v14, %v174_v23  ;;  %v725_v13 = vmul.f32 -1.442695, %v312_v24 }
  0xec   :  { %870 = vpow2.f32 %v726_v25  ;;  %v502_v25 = vld [vmem:[%s1185_s8 + $0x8] sm:$0xff] }
  0xed   :  { %v187_v12 = vadd.f32 %v186_v22, %v184_v26  ;;  %872 = vpow2.f32 %v725_v13  ;;  %v503_v26 = vld [vmem:[%s1185_s8 + $0x10] sm:$0xff]  ;;  %v504_v13 = vld [vmem:[%s1185_s8 + $0x18] sm:$0xff] }
  0xef   :  { %v1127_v28 = vadd.f32 %v187_v12, %v185_v27 }
  0xf2   :  { %v867_v29 = vpop.eup %866 }
  0xf3   :  { %v869_v30 = vpop.eup %868  ;;  %v333_v31 = vadd.f32 1.0, %v867_v29 }
  0xf4   :  { %v332_v32 = vadd.f32 1.0, %v869_v30 }
  0xf5   :  { %874 = vrcp.f32 %v333_v31 }
  0xf6   :  { %v871_v33 = vpop.eup %870  ;;  %876 = vrcp.f32 %v332_v32 }
  0xf7   :  { %v873_v34 = vpop.eup %872  ;;  %v335_v35 = vadd.f32 1.0, %v871_v33 }
  0xf8   :  { %v334_v36 = vadd.f32 1.0, %v873_v34 }
  0xf9   :  { %878 = vrcp.f32 %v335_v35 }
  0xfa   :  { %880 = vrcp.f32 %v334_v36 }
  0xff   :  { %v875_v14 = vpop.eup %874 }
 0x100   :  { %v877_v37 = vpop.eup %876  ;;  %v345_v38 = vmul.f32 %v875_v14, %v307_v2 }
 0x101   :  { %v344_v15 = vmul.f32 %v877_v37, %v302_v6 }
 0x103   :  { %v879_v39 = vpop.eup %878  ;;  %v847_v40 = vpack.c.bf16 %v345_v38, %v344_v15 }
 0x104   :  { %v881_v41 = vpop.eup %880  ;;  %v347_v42 = vmul.f32 %v879_v39, %v317_v19 }
 0x105   :  { %v346_v43 = vmul.f32 %v881_v41, %v312_v24  ;;  %848 = vmatprep.subr.bf16.mxu0 %v847_v40 }
 0x106   :  { %850 = vmatpush3.bf16.msra.mxu0 %v847_v40 }
 0x107   :  { %v851_v44 = vpack.c.bf16 %v347_v42, %v346_v43 }
 0x109   :  { %852 = vmatprep.subr.bf16.mxu0 %v851_v44 }
 0x10a   :  { %854 = vmatpush3.bf16.msra.mxu0 %v851_v44 }
 0x10d   :  { %812 = vmatmul.mubr.msk.f32.vlgmr.msra.gmra.mrb[4].mxu0 %vm84_vm0, %v349_v45  ;;  %v671_v45 = vpop.permute.xlu0 %670 }
 0x10e   :  { %814 = vmatprep.mubr.msk.f32.mxu0 %vm84_vm0, %v350_v46 }
 0x111   :  { %815 = vmatmul.mubr.msk.f32.gmra.mrb[6].mxu0 %vm84_vm0, %v351_v47 }
 0x1e0   :  { %v813_v50 = vpop.f32.mrb[4].mxu0 }
 0x1e1   :  { %v460_v59 = vadd.f32 %v813_v50, %v1103_v49  ;;  %v454_v61 = vpop.f32.mrb[5].mxu0 }
 0x1e2   :  { %v455_v62 = vadd.f32 %v454_v61, %v1107_v52 }
 0x1e3   :  { %v732_v63 = vmul.f32 -1.442695, %v460_v59 }
 0x1e4   :  { %v731_v0 = vmul.f32 -1.442695, %v455_v62  ;;  %v816_v1 = vpop.f32.mrb[6].mxu0 }
 0x1e5   :  { %882 = vpow2.f32 %v732_v63  ;;  %v470_v2 = vadd.f32 %v816_v1, %v1105_v51  ;;  %v464_v3 = vpop.f32.mrb[7].mxu0  ;;  %v189_v63 = vrot.slane %v1127_v28, 4  ;;  %v676_v1 = vpop.permute.xlu0 %675 }
 0x1e6   :  { %884 = vpow2.f32 %v731_v0  ;;  %v465_v4 = vadd.f32 %v464_v3, %v1111_v54 }
 0x1e7   :  { %v734_v5 = vmul.f32 -1.442695, %v470_v2 }
 0x1e8   :  { %v733_v6 = vmul.f32 -1.442695, %v465_v4 }
 0x1e9   :  { %886 = vpow2.f32 %v734_v5  ;;  %v190_v5 = vadd.f32 %v189_v63, %v1127_v28 }
 0x1ea   :  { %888 = vpow2.f32 %v733_v6 }
 0x1ef   :  { %v883_v7 = vpop.eup %882 }
 0x1f0   :  { %v885_v8 = vpop.eup %884  ;;  %v486_v49 = vadd.f32 1.0, %v883_v7 }
 0x1f1   :  { %v485_v9 = vadd.f32 1.0, %v885_v8 }
 0x1f2   :  { %890 = vrcp.f32 %v486_v49 }
 0x1f3   :  { %v887_v52 = vpop.eup %886  ;;  %892 = vrcp.f32 %v485_v9 }
 0x1f4   :  { %v889_v10 = vpop.eup %888  ;;  %v488_v11 = vadd.f32 1.0, %v887_v52 }
 0x1f5   :  { %v487_v16 = vadd.f32 1.0, %v889_v10 }
 0x1f6   :  { %894 = vrcp.f32 %v488_v11  ;;  %v695_v11 = vpop.permute.xlu0 %694 }
 0x1f7   :  { %896 = vrcp.f32 %v487_v16 }
 0x1fc   :  { %v891_v51 = vpop.eup %890 }
 0x1fd   :  { %v893_v17 = vpop.eup %892  ;;  %v498_v18 = vmul.f32 %v891_v51, %v460_v59 }
 0x1fe   :  { %v497_v54 = vmul.f32 %v893_v17, %v455_v62 }
 0x200   :  { %v895_v19 = vpop.eup %894  ;;  %v855_v20 = vpack.c.bf16 %v498_v18, %v497_v54  ;;  %v703_v54 = vstv %s1186_s0 }
 0x201   :  { %v897_v21 = vpop.eup %896  ;;  %v500_v22 = vmul.f32 %v895_v19, %v470_v2 }
 0x202   :  { %v499_v23 = vmul.f32 %v897_v21, %v465_v4  ;;  %856 = vmatprep.subr.bf16.mxu1 %v855_v20  ;;  %v697_v4 = vlaneseq }
 0x203   :  { %858 = vmatpush3.bf16.msra.mxu1 %v855_v20 }
 0x204   :  { %v859_v24 = vpack.c.bf16 %v500_v22, %v499_v23  ;;  %v698_v8 = vshrl.u32 %v697_v4, 7 }
 0x206   :  { %860 = vmatprep.subr.bf16.mxu1 %v859_v24 }
 0x207   :  { %862 = vmatpush3.bf16.msra.mxu1 %v859_v24 }
 0x20a   :  { %826 = vmatmul.mubr.msk.f32.vlgmr.msra.gmra.mrb[4].mxu1 %vm84_vm0, %v502_v25 }
 0x20b   :  { %828 = vmatprep.mubr.msk.f32.mxu1 %vm84_vm0, %v503_v26 }
 0x20e   :  { %829 = vmatmul.mubr.msk.f32.gmra.mrb[6].mxu1 %vm84_vm0, %v504_v13 }
 0x2dd   :  { %v827_v27 = vpop.f32.mrb[4].mxu1 }
 0x2de   :  { %v613_v12 = vadd.f32 %v827_v27, %v1109_v53  ;;  %v607_v29 = vpop.f32.mrb[5].mxu1 }
 0x2df   :  { %v608_v30 = vadd.f32 %v607_v29, %v1115_v56 }
 0x2e0   :  { %v740_v31 = vmul.f32 -1.442695, %v613_v12 }
 0x2e1   :  { %v739_v32 = vmul.f32 -1.442695, %v608_v30  ;;  %v830_v33 = vpop.f32.mrb[6].mxu1 }
 0x2e2   :  { %898 = vpow2.f32 %v740_v31  ;;  %v623_v34 = vadd.f32 %v830_v33, %v1113_v55  ;;  %v617_v35 = vpop.f32.mrb[7].mxu1 }
 0x2e3   :  { %900 = vpow2.f32 %v739_v32  ;;  %v618_v36 = vadd.f32 %v617_v35, %v1119_v58 }
 0x2e4   :  { %v742_v14 = vmul.f32 -1.442695, %v623_v34 }
 0x2e5   :  { %v741_v37 = vmul.f32 -1.442695, %v618_v36 }
 0x2e6   :  { %902 = vpow2.f32 %v742_v14 }
 0x2e7   :  { %904 = vpow2.f32 %v741_v37 }
 0x2ec   :  { %v899_v38 = vpop.eup %898 }
 0x2ed   :  { %v901_v15 = vpop.eup %900  ;;  %v639_v53 = vadd.f32 1.0, %v899_v38 }
 0x2ee   :  { %v638_v39 = vadd.f32 1.0, %v901_v15 }
 0x2ef   :  { %906 = vrcp.f32 %v639_v53 }
 0x2f0   :  { %v903_v56 = vpop.eup %902  ;;  %908 = vrcp.f32 %v638_v39 }
 0x2f1   :  { %v905_v40 = vpop.eup %904  ;;  %v641_v41 = vadd.f32 1.0, %v903_v56 }
 0x2f2   :  { %v640_v42 = vadd.f32 1.0, %v905_v40 }
 0x2f3   :  { %910 = vrcp.f32 %v641_v41 }
 0x2f4   :  { %912 = vrcp.f32 %v640_v42 }
 0x2f9   :  { %v907_v55 = vpop.eup %906 }
 0x2fa   :  { %v909_v43 = vpop.eup %908  ;;  %v651_v44 = vmul.f32 %v907_v55, %v613_v12 }
 0x2fb   :  { %v650_v58 = vmul.f32 %v909_v43, %v608_v30 }
 0x2fc   :  { %v679_v46 = vmul.f32 %v1117_v57, %v651_v44  ;;  %v191_v57 = vrot.slane %v190_v5, 2 }
 0x2fd   :  { %v911_v47 = vpop.eup %910  ;;  %v678_v48 = vmul.f32 %v1121_v60, %v650_v58  ;;  %v699_v60 = vsub.s32 0, %v698_v8 }
 0x2fe   :  { %v913_v50 = vpop.eup %912  ;;  %v653_v61 = vmul.f32 %v911_v47, %v623_v34  ;;  %v192_v52 = vadd.f32 %v191_v57, %v190_v5 }
 0x2ff   :  { %v682_v59 = vadd.f32 %v679_v46, %v678_v48  ;;  %v652_v62 = vmul.f32 %v913_v50, %v618_v36  ;;  %v700_v51 = vrot.slane %v695_v11, %v699_v60 }
 0x300   :  { %v681_v2 = vmul.f32 %v676_v1, %v653_v61  ;;  %v193_v17 = vrot.slane %v192_v52, 1 }
 0x301   :  { %v680_v0 = vmul.f32 %v671_v45, %v652_v62 }
 0x302   :  { %v194_v28 = vadd.f32 %v193_v17, %v192_v52 }
 0x303   :  { %v683_v3 = vadd.f32 %v682_v59, %v680_v0 }
 0x305   :  { %v684_v6 = vadd.f32 %v683_v3, %v681_v2 }
 0x307   :  { %v685_v7 = vrot.slane %v684_v6, 4 }
 0x309   :  { %v686_v49 = vadd.f32 %v685_v7, %v684_v6 }
 0x30b   :  { %v687_v9 = vrot.slane %v686_v49, 2 }
 0x30d   :  { %v688_v10 = vadd.f32 %v687_v9, %v686_v49 }
 0x30f   :  { %v689_v16 = vrot.slane %v688_v10, 1 }
 0x311   :  { %v690_v18 = vadd.f32 %v689_v16, %v688_v10 }
 0x313   :  { %v701_v19 = vadd.f32 %v700_v51, %v690_v18 }
 0x315   :  { %v704_v20 = vmul.f32 %v703_v54, %v701_v19 }
 0x317   :  { %v705_v21 = vadd.f32 %v704_v20, %v194_v28 }
 0x319   :  { %706 = vst [vmem:[%s1187_s12] sm:$0x1] %v705_v21 }

</bundles_post_ra>
